<compile_context>
chip_gen: v7x
topology: tpu7x:2x2x1
jax: 0.10.0
libtpu: 0.0.40
codegen_flags: <defaults>
</compile_context>

<pallas_src>
import functools

import jax
import jax.numpy as jnp
from jax.experimental import pallas as pl
from jax.experimental.pallas import tpu as pltpu

BN_EPS = 1e-5
LANE = 128
SUBLANE = 8


def _round_up(n, m):
    return ((n + m - 1) // m) * m


def _dnn_kernel(x_ref, w_ref, vec_ref, out_ref, *, layer_dims):
    """Fused MLP forward (single invocation, everything resident in VMEM).

    x_ref   : [B, n_feature]          unpadded input activations (f32)
    w_ref   : [sum_i rup8(din_i), P]  compact weight slab, [in, out] per layer
    vec_ref : [2L+2, P]               rows 2i/2i+1 = gamma_i/beta_i, row 2L = predict bias
    out_ref : [B, P]                  lane-dense padded output (wrapper slices to n_output)
    layer_dims : tuple of (din, dout) per layer, last entry is the predict head
    """
    L = len(layer_dims) - 1
    x = x_ref[...]  # f32 already
    off = 0
    for i, (din, dout) in enumerate(layer_dims):
        din_pad = _round_up(din, SUBLANE)
        # Contraction width: real n_feature for layer 0, rup8(din) afterwards.
        # Pad columns of x (beyond the previous layer's real dout) are exactly
        # zero, and padded weight rows/lanes are zero, so this is exact.
        k = min(x.shape[1], din_pad)
        xi = x if x.shape[1] == k else x[:, :k]
        w = w_ref[off:off + k, :]                       # static, 8-aligned offset
        h = jnp.dot(xi, w, preferred_element_type=jnp.float32)   # [B, P]

        if i < L:
            # BatchNorm1d, training-mode statistics, fused into one scale/shift.
            # Hidden Linear bias intentionally dropped: mu absorbs it exactly.
            mu = jnp.mean(h, axis=0, keepdims=True)                         # [1, P]
            var = jnp.maximum(
                jnp.mean(h * h, axis=0, keepdims=True) - mu * mu, 0.0)      # clamped
            scale = vec_ref[2 * i:2 * i + 1] * jax.lax.rsqrt(var + BN_EPS)  # gamma*inv_std
            shift = vec_ref[2 * i + 1:2 * i + 2] - mu * scale               # beta - mu*scale
            # TODO(synk): Dropout(p=0.5) omitted (identity).
            x = jnp.maximum(h * scale + shift, 0.0)                         # BN + ReLU
        else:
            # Predict head keeps its bias.
            out_ref[...] = h + vec_ref[2 * L:2 * L + 1]
        off += din_pad


def pack_dnn_params(hidden_params, pred_params):
    """Pack parameters for the kernel:
         w_slab   : [sum_i round_up(din_i, 8), P]  one compact 2-D slab,
                    each layer's [din, dout] weight at a static sublane offset,
                    lane (out) dim zero-padded to P = round_up(max dout, 128).
         vec_stack: [2L+2, P]  gamma_i/beta_i per hidden layer; row 2L = predict bias.
       Hidden-layer Linear biases are NOT packed (they cancel under train-mode BN).
       Returns (w_slab, vec_stack, layer_dims) with layer_dims a static tuple."""
    wp, bp = pred_params
    layers = [(w, g, be) for (w, _b, g, be) in hidden_params] + [(wp, None, None)]
    L = len(hidden_params)
    P = _round_up(max(w.shape[1] for (w, _, _) in layers), LANE)
    total_rows = sum(_round_up(w.shape[0], SUBLANE) for (w, _, _) in layers)

    w_slab = jnp.zeros((total_rows, P), jnp.float32)
    vec_stack = jnp.zeros((2 * L + 2, P), jnp.float32)
    off = 0
    for i, (w, g, be) in enumerate(layers):
        din, dout = w.shape
        w_slab = w_slab.at[off:off + din, :dout].set(w)
        if i < L:
            vec_stack = vec_stack.at[2 * i, :dout].set(g)        # gamma (0 on pad cols)
            vec_stack = vec_stack.at[2 * i + 1, :dout].set(be)   # beta  (0 on pad cols)
        off += _round_up(din, SUBLANE)
    vec_stack = vec_stack.at[2 * L, :wp.shape[1]].set(bp)        # predict bias

    layer_dims = tuple((w.shape[0], w.shape[1]) for (w, _, _) in layers)
    return w_slab, vec_stack, layer_dims


@functools.partial(jax.jit, static_argnames=("layer_dims", "n_output"))
def dnn_forward_pallas(x, w_slab, vec_stack, *, layer_dims, n_output):
    """x: [B, n_feature] f32; (w_slab, vec_stack, layer_dims) from pack_dnn_params."""
    B, n_feature = x.shape
    assert n_feature == layer_dims[0][0]
    P = w_slab.shape[-1]
    L = len(layer_dims) - 1

    kernel = functools.partial(_dnn_kernel, layer_dims=layer_dims)

    # Advisory cost estimate using the real (unpadded) dims.
    flops = 2 * B * sum(din * dout for din, dout in layer_dims)
    transcendentals = sum(dout for _, dout in layer_dims[:L])          # one rsqrt / BN feature
    bytes_accessed = 4 * (x.size + w_slab.size + vec_stack.size + B * P)

    out_pad = pl.pallas_call(
        kernel,
        out_shape=jax.ShapeDtypeStruct((B, P), jnp.float32),
        in_specs=[pl.BlockSpec(memory_space=pltpu.MemorySpace.VMEM)] * 3,
        out_specs=pl.BlockSpec(memory_space=pltpu.MemorySpace.VMEM),
        cost_estimate=pl.CostEstimate(
            flops=flops,
            transcendentals=transcendentals,
            bytes_accessed=bytes_accessed,
        ),
    )(x, w_slab, vec_stack)
    return out_pad[:, :n_output]


def dnn_forward_reference(x, hidden_params, pred_params):
    """Pure-JAX reference with the module's semantics (Linear+bias, BN train stats, ReLU)."""
    h = x
    for (w, b, g, be) in hidden_params:
        h = h @ w + b
        mu = jnp.mean(h, axis=0, keepdims=True)
        var = jnp.mean((h - mu) ** 2, axis=0, keepdims=True)
        h = (h - mu) * jax.lax.rsqrt(var + BN_EPS) * g + be
        h = jnp.maximum(h, 0.0)
    wp, bp = pred_params
    return h @ wp + bp


def init_dnn_params(key, n_feature, n_hidden, n_output):
    """Deterministic init mirroring DNN.__init__:
      Linear.weight ~ N(0, 0.1), Linear.bias = -0.0,
      BatchNorm1d: gamma = 1, beta = 0.
    PyTorch weights are [out, in]; we store the transpose [in, out]."""
    dims = [n_feature] + list(n_hidden)
    hidden_params = []
    for i in range(1, len(dims)):
        key, wk = jax.random.split(key)
        w_pt = 0.1 * jax.random.normal(wk, (dims[i], dims[i - 1]), jnp.float32)
        w = w_pt.T                                   # [in, out]
        b = jnp.full((dims[i],), -0.0, jnp.float32)
        gamma = jnp.ones((dims[i],), jnp.float32)
        beta = jnp.zeros((dims[i],), jnp.float32)
        hidden_params.append((w, b, gamma, beta))
    key, wk = jax.random.split(key)
    wp_pt = 0.1 * jax.random.normal(wk, (n_output, dims[-1]), jnp.float32)
    pred_params = (wp_pt.T, jnp.full((n_output,), -0.0, jnp.float32))
    return hidden_params, pred_params


if __name__ == "__main__":
    # Small, forward-consistent shapes: batch=8, n_feature=32, hidden=[64, 32], out=8.
    B, N_FEATURE, N_HIDDEN, N_OUTPUT = 8, 32, [64, 32], 8

    key = jax.random.PRNGKey(0)
    key, xk, pk = jax.random.split(key, 3)
    x = jax.random.normal(xk, (B, N_FEATURE), jnp.float32)

    hidden_params, pred_params = init_dnn_params(pk, N_FEATURE, N_HIDDEN, N_OUTPUT)

    # One-time host-side packing of parameters (compact 2-D slab, 3 kernel inputs total).
    w_slab, vec_stack, layer_dims = pack_dnn_params(hidden_params, pred_params)

    out = dnn_forward_pallas(x, w_slab, vec_stack,
                             layer_dims=layer_dims, n_output=N_OUTPUT)
    out = jax.block_until_ready(out)

    ref = dnn_forward_reference(x, hidden_params, pred_params)
    assert out.shape == (B, N_OUTPUT)
    assert jnp.allclose(out, ref, atol=1e-4, rtol=1e-4), "mismatch vs JAX reference"

    print("KERNEL_OK")
</pallas_src>

<mosaic_0001>
module attributes {stable_mosaic.version = 11 : i64} {
  func.func @_dnn_kernel(%arg0: memref<8x32xf32, #tpu.memory_space<vmem>>, %arg1: memref<128x128xf32, #tpu.memory_space<vmem>>, %arg2: memref<6x128xf32, #tpu.memory_space<vmem>>, %arg3: memref<8x128xf32, #tpu.memory_space<vmem>>) attributes {dimension_semantics = [], scalar_prefetch = 0 : i64, scratch_operands = 0 : i64, tpu.core_type = #tpu.core_type<tc>} {
    %c0 = arith.constant 0 : index
    %c0_0 = arith.constant 0 : index
    %0 = vector.load %arg0[%c0, %c0_0] : memref<8x32xf32, #tpu.memory_space<vmem>>, vector<8x32xf32>
    %c0_1 = arith.constant 0 : index
    %c0_2 = arith.constant 0 : index
    %1 = vector.load %arg1[%c0_1, %c0_2] : memref<128x128xf32, #tpu.memory_space<vmem>>, vector<32x128xf32>
    %cst = arith.constant dense<0.000000e+00> : vector<8x128xf32>
    %2 = tpu.matmul %0, %1, %cst {dimension_numbers = #tpu.dot_dimension_numbers<[1], [0], [0], [1], [0, 0, 1, 1], [], []>} : vector<8x32xf32>, vector<32x128xf32>, vector<8x128xf32> -> vector<8x128xf32>
    %cst_3 = arith.constant dense<0.000000e+00> : vector<128xf32>
    %3 = vector.multi_reduction <add>, %2, %cst_3 [0] : vector<8x128xf32> to vector<128xf32>
    %4 = vector.shape_cast %3 : vector<128xf32> to vector<1x128xf32>
    %cst_4 = arith.constant 8.000000e+00 : f32
    %5 = vector.broadcast %cst_4 : f32 to vector<1x128xf32>
    %6 = arith.divf %4, %5 : vector<1x128xf32>
    %7 = arith.mulf %2, %2 : vector<8x128xf32>
    %cst_5 = arith.constant dense<0.000000e+00> : vector<128xf32>
    %8 = vector.multi_reduction <add>, %7, %cst_5 [0] : vector<8x128xf32> to vector<128xf32>
    %9 = vector.shape_cast %8 : vector<128xf32> to vector<1x128xf32>
    %cst_6 = arith.constant 8.000000e+00 : f32
    %10 = vector.broadcast %cst_6 : f32 to vector<1x128xf32>
    %11 = arith.divf %9, %10 : vector<1x128xf32>
    %12 = arith.mulf %6, %6 : vector<1x128xf32>
    %13 = arith.subf %11, %12 : vector<1x128xf32>
    %cst_7 = arith.constant 0.000000e+00 : f32
    %14 = vector.broadcast %cst_7 : f32 to vector<1x128xf32>
    %15 = arith.maximumf %13, %14 : vector<1x128xf32>
    %c0_8 = arith.constant 0 : index
    %c0_9 = arith.constant 0 : index
    %16 = vector.load %arg2[%c0_8, %c0_9] : memref<6x128xf32, #tpu.memory_space<vmem>>, vector<1x128xf32>
    %cst_10 = arith.constant 9.99999974E-6 : f32
    %17 = vector.broadcast %cst_10 : f32 to vector<1x128xf32>
    %18 = arith.addf %15, %17 : vector<1x128xf32>
    %19 = math.rsqrt %18 : vector<1x128xf32>
    %20 = arith.mulf %16, %19 : vector<1x128xf32>
    %c1 = arith.constant 1 : index
    %c0_11 = arith.constant 0 : index
    %21 = vector.load %arg2[%c1, %c0_11] : memref<6x128xf32, #tpu.memory_space<vmem>>, vector<1x128xf32>
    %22 = arith.mulf %6, %20 : vector<1x128xf32>
    %23 = arith.subf %21, %22 : vector<1x128xf32>
    %24 = vector.broadcast %20 : vector<1x128xf32> to vector<8x128xf32>
    %25 = arith.mulf %2, %24 : vector<8x128xf32>
    %26 = vector.broadcast %23 : vector<1x128xf32> to vector<8x128xf32>
    %27 = arith.addf %25, %26 : vector<8x128xf32>
    %cst_12 = arith.constant 0.000000e+00 : f32
    %28 = vector.broadcast %cst_12 : f32 to vector<8x128xf32>
    %29 = arith.maximumf %27, %28 : vector<8x128xf32>
    %30 = vector.extract_strided_slice %29 {offsets = [0, 0], sizes = [8, 64], strides = [1, 1]} : vector<8x128xf32> to vector<8x64xf32>
    %c32 = arith.constant 32 : index
    %c0_13 = arith.constant 0 : index
    %31 = vector.load %arg1[%c32, %c0_13] : memref<128x128xf32, #tpu.memory_space<vmem>>, vector<64x128xf32>
    %cst_14 = arith.constant dense<0.000000e+00> : vector<8x128xf32>
    %32 = tpu.matmul %30, %31, %cst_14 {dimension_numbers = #tpu.dot_dimension_numbers<[1], [0], [0], [1], [0, 0, 1, 1], [], []>} : vector<8x64xf32>, vector<64x128xf32>, vector<8x128xf32> -> vector<8x128xf32>
    %cst_15 = arith.constant dense<0.000000e+00> : vector<128xf32>
    %33 = vector.multi_reduction <add>, %32, %cst_15 [0] : vector<8x128xf32> to vector<128xf32>
    %34 = vector.shape_cast %33 : vector<128xf32> to vector<1x128xf32>
    %cst_16 = arith.constant 8.000000e+00 : f32
    %35 = vector.broadcast %cst_16 : f32 to vector<1x128xf32>
    %36 = arith.divf %34, %35 : vector<1x128xf32>
    %37 = arith.mulf %32, %32 : vector<8x128xf32>
    %cst_17 = arith.constant dense<0.000000e+00> : vector<128xf32>
    %38 = vector.multi_reduction <add>, %37, %cst_17 [0] : vector<8x128xf32> to vector<128xf32>
    %39 = vector.shape_cast %38 : vector<128xf32> to vector<1x128xf32>
    %cst_18 = arith.constant 8.000000e+00 : f32
    %40 = vector.broadcast %cst_18 : f32 to vector<1x128xf32>
    %41 = arith.divf %39, %40 : vector<1x128xf32>
    %42 = arith.mulf %36, %36 : vector<1x128xf32>
    %43 = arith.subf %41, %42 : vector<1x128xf32>
    %cst_19 = arith.constant 0.000000e+00 : f32
    %44 = vector.broadcast %cst_19 : f32 to vector<1x128xf32>
    %45 = arith.maximumf %43, %44 : vector<1x128xf32>
    %c2 = arith.constant 2 : index
    %c0_20 = arith.constant 0 : index
    %46 = vector.load %arg2[%c2, %c0_20] : memref<6x128xf32, #tpu.memory_space<vmem>>, vector<1x128xf32>
    %cst_21 = arith.constant 9.99999974E-6 : f32
    %47 = vector.broadcast %cst_21 : f32 to vector<1x128xf32>
    %48 = arith.addf %45, %47 : vector<1x128xf32>
    %49 = math.rsqrt %48 : vector<1x128xf32>
    %50 = arith.mulf %46, %49 : vector<1x128xf32>
    %c3 = arith.constant 3 : index
    %c0_22 = arith.constant 0 : index
    %51 = vector.load %arg2[%c3, %c0_22] : memref<6x128xf32, #tpu.memory_space<vmem>>, vector<1x128xf32>
    %52 = arith.mulf %36, %50 : vector<1x128xf32>
    %53 = arith.subf %51, %52 : vector<1x128xf32>
    %54 = vector.broadcast %50 : vector<1x128xf32> to vector<8x128xf32>
    %55 = arith.mulf %32, %54 : vector<8x128xf32>
    %56 = vector.broadcast %53 : vector<1x128xf32> to vector<8x128xf32>
    %57 = arith.addf %55, %56 : vector<8x128xf32>
    %cst_23 = arith.constant 0.000000e+00 : f32
    %58 = vector.broadcast %cst_23 : f32 to vector<8x128xf32>
    %59 = arith.maximumf %57, %58 : vector<8x128xf32>
    %60 = vector.extract_strided_slice %59 {offsets = [0, 0], sizes = [8, 32], strides = [1, 1]} : vector<8x128xf32> to vector<8x32xf32>
    %c96 = arith.constant 96 : index
    %c0_24 = arith.constant 0 : index
    %61 = vector.load %arg1[%c96, %c0_24] : memref<128x128xf32, #tpu.memory_space<vmem>>, vector<32x128xf32>
    %cst_25 = arith.constant dense<0.000000e+00> : vector<8x128xf32>
    %62 = tpu.matmul %60, %61, %cst_25 {dimension_numbers = #tpu.dot_dimension_numbers<[1], [0], [0], [1], [0, 0, 1, 1], [], []>} : vector<8x32xf32>, vector<32x128xf32>, vector<8x128xf32> -> vector<8x128xf32>
    %c4 = arith.constant 4 : index
    %c0_26 = arith.constant 0 : index
    %63 = vector.load %arg2[%c4, %c0_26] : memref<6x128xf32, #tpu.memory_space<vmem>>, vector<1x128xf32>
    %64 = vector.broadcast %63 : vector<1x128xf32> to vector<8x128xf32>
    %65 = arith.addf %62, %64 : vector<8x128xf32>
    %c0_27 = arith.constant 0 : index
    %c0_28 = arith.constant 0 : index
    %66 = vector.load %arg3[%c0_27, %c0_28] : memref<8x128xf32, #tpu.memory_space<vmem>>, vector<8x128xf32>
    tpu.vector_store %arg3[%c0_27, %c0_28], %65 {strides = array<i32>} : memref<8x128xf32, #tpu.memory_space<vmem>>, vector<8x128xf32>,
    return
  }
}

</mosaic_0001>

<bundles_post_ra>
// kernel: dnn_forward_pallas.1
= control target key start
LH: loop header
LB: loop body
LE: loop exit
PB: predicated region body
PF: predicated region fallthrough
CT: control target
= control target key end

     0   :  { %8 = vsyncpa [#allocation3], 0  ;;  %s670_s0 = inlined_call_operand.hbm [shape: f32[8,32], index: 0, kind: input, shape index: {}]   ;;  %s671_s1 = inlined_call_operand.hbm [shape: f32[128,128], index: 1, kind: input, shape index: {}]   ;;  %s672_s2 = inlined_call_operand.hbm [shape: f32[6,128], index: 2, kind: input, shape index: {}]   ;;  %s673_s3 = inlined_call_operand.hbm [shape: f32[8,128], index: 3, kind: output, shape index: {}]  }
   0x1   :  { %9 = vsyncpa [#allocation6], 0 }
   0x2   :  { %10 = vsyncpa [#allocation4], 0  ;;  %s580_s12 = smov [#allocation5]   ;;  %s486_s16 = scalar_lea.hbm %s671_s1, 2048 }
   0x3   :  { %s26_s13 = sshll.u32 %s580_s12, 4  ;;  %p487_p0 = scmp.ne.s32.totalorder %s671_s1, %s486_s16  ;;  %s27_s13 = int_to_ptr.vmem [resolvable:$true] %s26_s13 }
   0x4   :  { %p490_p1 = scmp.lt.u32.totalorder %s486_s16, %s671_s1 }
   0x6   :  { %p492_p2 = pnand %p490_p1, %p487_p0 }
   0x8   :  { %495 = shalt.err (!%p492_p2)
}
   0x9   :  { %s496_s21 = scalar_lea.vmem %s27_s13, 2048  ;;  %p501_p4 = scmp.lt.s32.totalorder %s27_s13, %s27_s13 }
   0xa   :  { %p497_p3 = scmp.ne.s32.totalorder %s27_s13, %s496_s21  ;;  %p502_p5 = scmp.lt.s32.totalorder %s496_s21, %s496_s21 }
   0xc   :  { %p503_p6 = por %p502_p5, %p501_p4 }
   0xe   :  { %p504_p7 = pnand %p503_p6, %p497_p3 }
  0x10   :  { %507 = shalt.err (!%p504_p7)
}
  0x11   :  { %s581_s22 = smov 128   ;;  %s582_s23 = smov 8  }
  0x12   :  { %32 = dma.hbm_to_vmem [thread:$0]  %s671_s1, 2048, %s27_s13, [#allocation6], %s581_s22, %s581_s22, %s582_s23  }
  0x13   :  { %s583_s26 = smov [#allocation2]   ;;  %s584_s28 = smov [#allocation7]  }
  0x14   :  { %s17_s27 = sshll.u32 %s583_s26, 4  ;;  %s39_s29 = sshll.u32 %s584_s28, 4  ;;  %s18_s27 = int_to_ptr.vmem [resolvable:$true] %s17_s27  ;;  %s40_s29 = int_to_ptr.vmem [resolvable:$true] %s39_s29 }
  0x15   :  { %s508_s5 = scalar_lea.hbm %s670_s0, 128 }
  0x16   :  { %p509_p8 = scmp.ne.s32.totalorder %s670_s0, %s508_s5  ;;  %p512_p9 = scmp.lt.u32.totalorder %s508_s5, %s670_s0 }
  0x18   :  { %p514_p10 = pnand %p512_p9, %p509_p8 }
  0x1a   :  { %517 = shalt.err (!%p514_p10)
}
  0x1b   :  { %s518_s1 = scalar_lea.vmem %s18_s27, 128  ;;  %p523_p12 = scmp.lt.s32.totalorder %s18_s27, %s18_s27 }
  0x1c   :  { %p519_p11 = scmp.ne.s32.totalorder %s18_s27, %s518_s1  ;;  %p524_p13 = scmp.lt.s32.totalorder %s518_s1, %s518_s1 }
  0x1e   :  { %p525_p0 = por %p524_p13, %p523_p12 }
  0x20   :  { %p526_p1 = pnand %p525_p0, %p519_p11 }
  0x22   :  { %529 = shalt.err (!%p526_p1)
}
  0x23   :  { %20 = dma.hbm_to_vmem [thread:$0]  %s670_s0, 128, %s18_s27, [#allocation3]  }
  0x24   :  { %s530_s14 = scalar_lea.hbm %s672_s2, 128 }
  0x25   :  { %p531_p2 = scmp.ne.s32.totalorder %s672_s2, %s530_s14  ;;  %p534_p3 = scmp.lt.u32.totalorder %s530_s14, %s672_s2 }
  0x27   :  { %p536_p4 = pnand %p534_p3, %p531_p2 }
  0x29   :  { %539 = shalt.err (!%p536_p4)
}
  0x2a   :  { %s540_s19 = scalar_lea.vmem %s40_s29, 128  ;;  %p545_p6 = scmp.lt.s32.totalorder %s40_s29, %s40_s29 }
  0x2b   :  { %p541_p5 = scmp.ne.s32.totalorder %s40_s29, %s540_s19  ;;  %p546_p7 = scmp.lt.s32.totalorder %s540_s19, %s540_s19 }
  0x2d   :  { %p547_p8 = por %p546_p7, %p545_p6 }
  0x2f   :  { %p548_p9 = pnand %p547_p8, %p541_p5 }
  0x31   :  { %551 = shalt.err (!%p548_p9)
}
  0x32   :  { %42 = dma.hbm_to_vmem [thread:$0]  %s672_s2, 128, %s40_s29, [#allocation6]  }
  0x33   :  { %574 = dma.done.wait [#allocation3], 128  }
  0x34   :  { %575 = vsyncadd [#allocation3], 4294967168 }
  0x35   :  { %576 = dma.done.wait [#allocation6], 2176  }
  0x36   :  { %577 = vsyncadd [#allocation6], 4294965120  ;;  %v585_v0 = vmov 0.0|0.0   ;;  %vm586_vm0 = vmmov 0   ;;  %v587_v1 = vmov 0.0   ;;  %v53_v2 = vld [vmem:[#allocation5] sm:$0xff]  ;;  %v157_v42 = vlaneseq }
  0x37   :  { %449 = vmatprep.subr.bf16.mxu0 %v585_v0  ;;  %416 = vmatprep.mubr.msk.f32.mxu0 %vm586_vm0, %v587_v1  ;;  %v54_v3 = vld [vmem:[#allocation5 + $0x8] sm:$0xff]  ;;  %v55_v4 = vld [vmem:[#allocation5 + $0x10] sm:$0xff]  ;;  %v56_v6 = vld [vmem:[#allocation5 + $0x18] sm:$0xff]  ;;  %vm57_vm1 = vcmask 261120   ;;  %vm176_vm2 = vcmask 523264   ;;  %s588_s2 = smov [#allocation8]  }
  0x38   :  { %455 = vmatprep.subr.bf16.mxu1 %v585_v0  ;;  %435 = vmatprep.mubr.msk.f32.mxu1 %vm586_vm0, %v587_v1  ;;  %v450_v5 = vpack.c.bf16 %v54_v3, %v53_v2  ;;  %v453_v7 = vpack.c.bf16 %v56_v6, %v55_v4  ;;  %v52_v8 = vld [vmem:[#allocation2] sm:$0xff]  ;;  %v168_v9 = vld [vmem:[#allocation5 + $0x20] sm:$0xff]  ;;  %v169_v10 = vld [vmem:[#allocation5 + $0x28] sm:$0xff]  ;;  %v158_v43 = vshrl.u32 %v157_v42, 7  ;;  %s375_s21 = sshll.u32 %s588_s2, 4  ;;  %s376_s21 = int_to_ptr.vmem [resolvable:$true] %s375_s21 }
  0x39   :  { %v456_v11 = vpack.c.bf16 %v169_v10, %v168_v9  ;;  %v170_v12 = vld [vmem:[#allocation5 + $0x30] sm:$0xff]  ;;  %v171_v13 = vld [vmem:[#allocation5 + $0x38] sm:$0xff]  ;;  %v172_v15 = vld [vmem:[#allocation5 + $0x40] sm:$0xff]  ;;  %s552_s22 = scalar_lea.vmem %s376_s21, 128  ;;  %p557_p11 = scmp.lt.s32.totalorder %s376_s21, %s376_s21 }
  0x3a   :  { %451 = vmatpush3.bf16.msra.mxu0 %v450_v5  ;;  %v459_v14 = vpack.c.bf16 %v171_v13, %v170_v12  ;;  %v173_v16 = vld [vmem:[#allocation5 + $0x48] sm:$0xff]  ;;  %v174_v18 = vld [vmem:[#allocation5 + $0x50] sm:$0xff]  ;;  %v175_v19 = vld [vmem:[#allocation5 + $0x58] sm:$0xff]  ;;  %v159_v45 = vsub.s32 0, %v158_v43  ;;  %p553_p10 = scmp.ne.s32.totalorder %s376_s21, %s552_s22  ;;  %p558_p12 = scmp.lt.s32.totalorder %s552_s22, %s552_s22 }
  0x3b   :  { %452 = vmatprep.subr.bf16.mxu0 %v585_v0  ;;  %457 = vmatpush3.bf16.msra.mxu1 %v456_v11  ;;  %v462_v17 = vpack.c.bf16 %v173_v16, %v172_v15  ;;  %v465_v20 = vpack.c.bf16 %v175_v19, %v174_v18  ;;  %v150_v44 = vld [vmem:[#allocation7] sm:$0x1]  ;;  %v154_v48 = vld [vmem:[#allocation7 + $0x1] sm:$0x1]  ;;  %v287_v57 = vld [vmem:[#allocation5 + $0x68] sm:$0xff] }
  0x3c   :  { %458 = vmatprep.subr.bf16.mxu1 %v585_v0  ;;  %v286_v56 = vld [vmem:[#allocation5 + $0x60] sm:$0xff]  ;;  %v288_v59 = vld [vmem:[#allocation5 + $0x70] sm:$0xff]  ;;  %v289_v60 = vld [vmem:[#allocation5 + $0x78] sm:$0xff]  ;;  %p559_p13 = por %p558_p12, %p557_p11 }
  0x3d   :  { %v468_v58 = vpack.c.bf16 %v287_v57, %v286_v56  ;;  %v471_v61 = vpack.c.bf16 %v289_v60, %v288_v59  ;;  %v268_v19 = vld [vmem:[#allocation7 + $0x2] sm:$0x1] }
  0x3e   :  { %454 = vmatpush3.bf16.msra.mxu0 %v453_v7  ;;  %p560_p0 = pnand %p559_p13, %p553_p10 }
  0x3f   :  { %467 = vmatprep.subr.bf16.mxu0 %v585_v0  ;;  %460 = vmatpush3.bf16.msra.mxu1 %v459_v14 }
  0x40   :  { %461 = vmatprep.subr.bf16.mxu1 %v585_v0 }
  0x41   :  { %417 = vmatmul.mubr.msk.f32.vlgmr.msra.gmra.mrb[0].mxu0 %vm57_vm1, %v52_v8 }
  0x42   :  { %446 = vmatprep.mubr.msk.f32.mxu0 %vm586_vm0, %v587_v1  ;;  %469 = vmatpush3.bf16.msra.mxu0 %v468_v58 }
  0x43   :  { %463 = vmatpush3.bf16.msra.mxu1 %v462_v17  ;;  %470 = vmatprep.subr.bf16.mxu0 %v585_v0 }
  0x44   :  { %464 = vmatprep.subr.bf16.mxu1 %v585_v0 }
  0x46   :  { %472 = vmatpush3.bf16.msra.mxu0 %v471_v61 }
  0x47   :  { %466 = vmatpush3.bf16.msra.mxu1 %v465_v20 }
 0x114   :  { %v127_v21 = vpop.f32.mrb[0].mxu0 }
 0x115   :  { %v131_v22 = vrot.slane %v127_v21, 4  ;;  %v139_v23 = vmul.f32 %v127_v21, %v127_v21  ;;  %v418_v24 = vpop.f32.mrb[1].mxu0 }
 0x117   :  { %v132_v25 = vadd.f32 %v131_v22, %v127_v21  ;;  %v140_v26 = vrot.slane %v139_v23, 4  ;;  %v272_v22 = vld [vmem:[#allocation7 + $0x3] sm:$0x1] }
 0x119   :  { %v133_v27 = vrot.slane %v132_v25, 2  ;;  %v141_v28 = vadd.f32 %v140_v26, %v139_v23 }
 0x11b   :  { %v134_v29 = vadd.f32 %v133_v27, %v132_v25  ;;  %v142_v30 = vrot.slane %v141_v28, 2 }
 0x11d   :  { %v135_v31 = vrot.slane %v134_v29, 1  ;;  %v143_v32 = vadd.f32 %v142_v30, %v141_v28  ;;  %v387_v30 = vld [vmem:[#allocation7 + $0x4] ss:$0 sm:$0xff] }
 0x11f   :  { %v136_v33 = vadd.f32 %v135_v31, %v134_v29  ;;  %v144_v34 = vrot.slane %v143_v32, 1 }
 0x121   :  { %v138_v35 = vmul.f32 0.125, %v136_v33  ;;  %v145_v36 = vadd.f32 %v144_v34, %v143_v32 }
 0x123   :  { %v146_v37 = vmul.f32 0.125, %v145_v36  ;;  %v147_v38 = vmul.f32 %v138_v35, %v138_v35 }
 0x125   :  { %v148_v39 = vsub.f32 %v146_v37, %v147_v38 }
 0x127   :  { %v149_v40 = vmax.f32 %v148_v39, 0.0 }
 0x129   :  { %v151_v41 = vadd.f32 1e-05, %v149_v40 }
 0x12b   :  { %482 = vrsqrt.f32 %v151_v41 }
 0x135   :  { %v483_v46 = vpop.eup %482 }
 0x136   :  { %v153_v47 = vmul.f32 %v483_v46, %v150_v44 }
 0x138   :  { %v155_v49 = vmul.f32 %v153_v47, %v138_v35  ;;  %v160_v50 = vrot.slane %v153_v47, %v159_v45 }
 0x13a   :  { %v156_v51 = vsub.f32 %v154_v48, %v155_v49  ;;  %v161_v52 = vmul.f32 %v160_v50, %v127_v21 }
 0x13c   :  { %v165_v53 = vrot.slane %v156_v51, %v159_v45 }
 0x13e   :  { %v166_v54 = vadd.f32 %v165_v53, %v161_v52 }
 0x140   :  { %v167_v55 = vmax.f32 %v166_v54, 0.0 }
 0x142   :  { %436 = vmatmul.mubr.msk.f32.vlgmr.msra.gmra.mrb[0].mxu1 %vm176_vm2, %v167_v55 }
 0x215   :  { %v246_v62 = vpop.f32.mrb[0].mxu1 }
 0x216   :  { %v250_v63 = vrot.slane %v246_v62, 4  ;;  %v257_v1 = vmul.f32 %v246_v62, %v246_v62  ;;  %v437_v2 = vpop.f32.mrb[1].mxu1 }
 0x218   :  { %v251_v3 = vadd.f32 %v250_v63, %v246_v62  ;;  %v258_v4 = vrot.slane %v257_v1, 4 }
 0x21a   :  { %v252_v5 = vrot.slane %v251_v3, 2  ;;  %v259_v6 = vadd.f32 %v258_v4, %v257_v1 }
 0x21c   :  { %v253_v7 = vadd.f32 %v252_v5, %v251_v3  ;;  %v260_v8 = vrot.slane %v259_v6, 2 }
 0x21e   :  { %v254_v9 = vrot.slane %v253_v7, 1  ;;  %v261_v10 = vadd.f32 %v260_v8, %v259_v6 }
 0x220   :  { %v255_v11 = vadd.f32 %v254_v9, %v253_v7  ;;  %v262_v12 = vrot.slane %v261_v10, 1 }
 0x222   :  { %v256_v13 = vmul.f32 0.125, %v255_v11  ;;  %v263_v0 = vadd.f32 %v262_v12, %v261_v10 }
 0x224   :  { %v264_v14 = vmul.f32 0.125, %v263_v0  ;;  %v265_v15 = vmul.f32 %v256_v13, %v256_v13 }
 0x226   :  { %v266_v16 = vsub.f32 %v264_v14, %v265_v15 }
 0x228   :  { %v267_v17 = vmax.f32 %v266_v16, 0.0 }
 0x22a   :  { %v269_v18 = vadd.f32 1e-05, %v267_v17 }
 0x22c   :  { %484 = vrsqrt.f32 %v269_v18 }
 0x236   :  { %v485_v20 = vpop.eup %484 }
 0x237   :  { %v271_v21 = vmul.f32 %v485_v20, %v268_v19 }
 0x239   :  { %v273_v23 = vmul.f32 %v271_v21, %v256_v13  ;;  %v278_v24 = vrot.slane %v271_v21, %v159_v45 }
 0x23b   :  { %v274_v25 = vsub.f32 %v272_v22, %v273_v23  ;;  %v279_v26 = vmul.f32 %v278_v24, %v246_v62 }
 0x23d   :  { %v283_v27 = vrot.slane %v274_v25, %v159_v45 }
 0x23f   :  { %v284_v28 = vadd.f32 %v283_v27, %v279_v26 }
 0x241   :  { %v285_v29 = vmax.f32 %v284_v28, 0.0 }
 0x243   :  { %447 = vmatmul.mubr.msk.f32.vlgmr.msra.gmra.mrb[2].mxu0 %vm57_vm1, %v285_v29 }
 0x316   :  { %v364_v31 = vpop.f32.mrb[2].mxu0 }
 0x317   :  { %v365_v32 = vadd.f32 %v387_v30, %v364_v31  ;;  %v448_v33 = vpop.f32.mrb[3].mxu0 }
 0x319   :  { %368 = vst [vmem:[#allocation8] sm:$0xff] %v365_v32 }
 0x31a   :  { %563 = shalt.err (!%p560_p0)
}
 0x31b   :  { %s564_s25 = scalar_lea.hbm %s673_s3, 128 }
 0x31c   :  { %p565_p1 = scmp.ne.s32.totalorder %s673_s3, %s564_s25  ;;  %p568_p2 = scmp.lt.u32.totalorder %s564_s25, %s673_s3 }
 0x31e   :  { %p570_p3 = pnand %p568_p2, %p565_p1 }
 0x320   :  { %573 = shalt.err (!%p570_p3)
}
 0x321   :  { %378 = dma.vmem_to_hbm [thread:$0]  %s376_s21, 128, %s673_s3, [#allocation4]  }
 0x322   :  { %578 = dma.done.wait [#allocation4], 128  }
 0x323   :  { %579 = vsyncadd [#allocation4], 4294967168 }
 0x324   :  { %382 = vsyncpa [#allocation3], 1 }
 0x325   :  { %383 = vsyncpa [#allocation6], 1 }
 0x326   :  { %384 = vsyncpa [#allocation4], 1 }

</bundles_post_ra>
